<compile_context>
chip_gen: v6e
topology: v6e:2x2x1
jax: 0.10.0
libtpu: 0.0.40
codegen_flags: <defaults>
</compile_context>

<pallas_src>
import functools

import jax
import jax.numpy as jnp
from jax.experimental import pallas as pl
from jax.experimental.pallas import tpu as pltpu


# ----------------------------------------------------------------------------
# In-kernel math helpers
# ----------------------------------------------------------------------------
def _erf_approx(z):
    # TODO(synk): lax.erf (exact GELU) may lack a Mosaic lowering; use the
    # Abramowitz & Stegun 7.1.26 polynomial (<=1.5e-7 abs error, i.e. within
    # f32 rounding of the exact erf used by PyTorch F.gelu).
    a1, a2, a3 = 0.254829592, -0.284496736, 1.421413741
    a4, a5, p = -1.453152027, 1.061405429, 0.3275911
    az = jnp.abs(z)
    t = 1.0 / (1.0 + p * az)
    poly = t * (a1 + t * (a2 + t * (a3 + t * (a4 + t * a5))))
    e = 1.0 - poly * jnp.exp(-az * az)
    return jnp.where(z >= 0, e, -e)


def _gelu_exact(x):
    # x * Phi(x) = 0.5 * x * (1 + erf(x / sqrt(2)))  (matches F.gelu default)
    return 0.5 * x * (1.0 + _erf_approx(x * 0.7071067811865476))


# ----------------------------------------------------------------------------
# Fused kernel: patch-embed + all ResMLP layers + mean-pool + classifier
# ----------------------------------------------------------------------------
def _fused_resmlp_kernel(
    flat_ref,      # (N, Cpp)   N = BB * P, row index = b*P + p
    w_patch_ref,   # (Cpp, F)
    b_patch_ref,   # (1, F)
    pool_ref,      # (BB, N)    mean-pool matrix (1/P on own-batch rows)
    w_cls_ref,     # (F, C)
    b_cls_ref,     # (1, C)
    aff_ref,       # (1, 8, F)  [a1, b1, a2, b2, a3, b3, a4, b4] for this layer
    w_tok_ref,     # (1, N, N)  kron(I_BB, W_tok)  (block-diagonal token mix)
    b_tok_ref,     # (1, N, 1)  token-mix bias expanded to rows
    w_ff1_ref,     # (1, F, H)
    b_ff1_ref,     # (1, 1, H)
    w_ff2_ref,     # (1, H, F)
    b_ff2_ref,     # (1, 1, F)
    o_ref,         # (BB, C)    classifier logits
    tok_ref,       # VMEM scratch (N, F) f32 — token residual stream
):
    layer = pl.program_id(0)

    # ---- patch embedding (first grid step only) ----
    @pl.when(layer == 0)
    def _embed():
        tok_ref[...] = (
            jnp.dot(flat_ref[...], w_patch_ref[...],
                    preferred_element_type=jnp.float32)
            + b_patch_ref[...]
        )

    aff = aff_ref[0]                                  # (8, F)
    a1, b1 = aff[0:1, :], aff[1:2, :]
    a2, b2 = aff[2:3, :], aff[3:4, :]
    a3, b3 = aff[4:5, :], aff[5:6, :]
    a4, b4 = aff[6:7, :], aff[7:8, :]

    x = tok_ref[...]                                  # (N, F)

    # ---- CommunicationLayer ----
    x = a1 * x + b1
    res = x
    y = (
        jnp.dot(w_tok_ref[0], x, preferred_element_type=jnp.float32)
        + b_tok_ref[0]
    )
    x = a2 * y + b2 + res

    # ---- FeedForward ----
    x = a3 * x + b3
    res = x
    h = (
        jnp.dot(x, w_ff1_ref[0], preferred_element_type=jnp.float32)
        + b_ff1_ref[0]
    )
    h = _gelu_exact(h)
    y = (
        jnp.dot(h, w_ff2_ref[0], preferred_element_type=jnp.float32)
        + b_ff2_ref[0]
    )
    tok_ref[...] = a4 * y + b4 + res

    # ---- mean-pool + classifier (last grid step only) ----
    @pl.when(layer == pl.num_programs(0) - 1)
    def _head():
        pooled = jnp.dot(pool_ref[...], tok_ref[...],
                         preferred_element_type=jnp.float32)      # (BB, F)
        o_ref[...] = (
            jnp.dot(pooled, w_cls_ref[...],
                    preferred_element_type=jnp.float32)
            + b_cls_ref[...]
        )


# ----------------------------------------------------------------------------
# Wrapper around pallas_call
# ----------------------------------------------------------------------------
def fused_token_pipeline(flat, params, *, BB, P):
    # flat: (N, Cpp) with N = BB*P (batch-major row order b*P + p)
    N, Cpp = flat.shape
    F = params["w_patch"].shape[1]
    C = params["w_cls"].shape[1]
    L, _, H = params["w_ff1"].shape

    eye = jnp.eye(BB, dtype=jnp.float32)
    # Block-diagonal token-mix weight: out[b*P+p] = sum_q W[p,q] x[b*P+q]
    w_tok_kron = jnp.einsum(
        "bc,lpq->lbpcq", eye, params["w_tok"]).reshape(L, N, N)
    b_tok_exp = jnp.tile(params["b_tok"], (1, BB, 1))            # (L, N, 1)
    # Mean over patches per batch element as a matmul.
    pool = jnp.kron(eye, jnp.full((1, P), 1.0 / P, jnp.float32))  # (BB, N)

    const2 = lambda shape: pl.BlockSpec(shape, lambda l: (0, 0))
    per_layer = lambda shape: pl.BlockSpec((1,) + shape, lambda l: (l, 0, 0))

    grid_spec = pltpu.PrefetchScalarGridSpec(
        num_scalar_prefetch=0,
        grid=(L,),
        in_specs=[
            const2((N, Cpp)),      # flat patches
            const2((Cpp, F)),      # w_patch
            const2((1, F)),        # b_patch
            const2((BB, N)),       # pooling matrix
            const2((F, C)),        # w_cls
            const2((1, C)),        # b_cls
            per_layer((8, F)),     # packed affine params
            per_layer((N, N)),     # token-mix weight (kron)
            per_layer((N, 1)),     # token-mix bias
            per_layer((F, H)),     # ff fc1 weight
            per_layer((1, H)),     # ff fc1 bias
            per_layer((H, F)),     # ff fc2 weight
            per_layer((1, F)),     # ff fc2 bias
        ],
        out_specs=pl.BlockSpec((BB, C), lambda l: (0, 0)),
        scratch_shapes=[pltpu.VMEM((N, F), jnp.float32)],
    )

    return pl.pallas_call(
        _fused_resmlp_kernel,
        out_shape=jax.ShapeDtypeStruct((BB, C), jnp.float32),
        grid_spec=grid_spec,
        compiler_params=pltpu.CompilerParams(
            # layers are sequential through the residual stream in scratch
            dimension_semantics=("arbitrary",),
        ),
    )(
        flat, params["w_patch"], params["b_patch"], pool,
        params["w_cls"], params["b_cls"],
        params["aff"], w_tok_kron, b_tok_exp,
        params["w_ff1"], params["b_ff1"],
        params["w_ff2"], params["b_ff2"],
    )


# ----------------------------------------------------------------------------
# Model glue (patchification + params are plain JAX / Python)
# ----------------------------------------------------------------------------
def patchify(x, patch_size):
    # NCHW -> (B, num_patches, C*p*p); patch index row-major over the grid,
    # feature order (c, u, v) matching Conv2d weight flattening (F, C, p, p).
    B, C, H, W = x.shape
    p = patch_size
    gh, gw = H // p, W // p
    x = x.reshape(B, C, gh, p, gw, p)
    x = x.transpose(0, 2, 4, 1, 3, 5)
    return x.reshape(B, gh * gw, C * p * p)


def init_params(key, *, image_size, patch_size, in_channels, num_features,
                expansion_factor, num_layers, num_classes):
    sqrt_np, rem = divmod(image_size, patch_size)
    assert rem == 0, "`image_size` must be divisible by `patch_size`"
    P = sqrt_np ** 2
    F = num_features
    H = F * expansion_factor
    Cpp = in_channels * patch_size * patch_size

    keys = jax.random.split(key, 6)
    dense = lambda k, shape: (0.02 * jax.random.normal(k, shape)).astype(
        jnp.float32)

    # Packed affine params per layer: [a1, b1, a2, b2, a3, b3, a4, b4]
    aff = jnp.tile(
        jnp.array([1, 0, 1, 0, 1, 0, 1, 0], jnp.float32)[None, :, None],
        (num_layers, 1, F))

    return {
        # patch embedding (Conv2d k=s=p == linear over flattened patches)
        "w_patch": dense(keys[0], (Cpp, F)),
        "b_patch": jnp.zeros((1, F), jnp.float32),
        "w_cls": dense(keys[1], (F, num_classes)),
        "b_cls": jnp.zeros((1, num_classes), jnp.float32),
        "w_change": dense(keys[2], (2 * num_classes, 2)),
        "b_change": jnp.zeros((1, 2), jnp.float32),
        # stacked per-layer params (L, ...)
        "aff": aff,
        "w_tok": dense(keys[3], (num_layers, P, P)),
        "b_tok": jnp.zeros((num_layers, P, 1), jnp.float32),
        "w_ff1": dense(keys[4], (num_layers, F, H)),
        "b_ff1": jnp.zeros((num_layers, 1, H), jnp.float32),
        "w_ff2": dense(keys[5], (num_layers, H, F)),
        "b_ff2": jnp.zeros((num_layers, 1, F), jnp.float32),
    }


@functools.partial(jax.jit, static_argnames=("patch_size",))
def resmlp_forward(x, x2, params, *, patch_size):
    B = x.shape[0]
    xx = jnp.concatenate([x, x2], axis=0)              # (2B, C, H, W)
    flat = patchify(xx, patch_size)                    # (2B, P, C*p*p)
    BB, P, Cpp = flat.shape
    flat = flat.reshape(BB * P, Cpp)                   # row index b*P + p

    logits = fused_token_pipeline(flat, params, BB=BB, P=P)   # (2B, num_classes)

    cat = jnp.concatenate([logits[:B], logits[B:]], axis=1)   # (B, 2*num_classes)
    # Tiny head: plain XLA (a Pallas call would be pure launch/DMA overhead).
    return cat @ params["w_change"] + params["b_change"]       # (B, 2)


if __name__ == "__main__":
    IMAGE_SIZE = 16
    PATCH_SIZE = 4       # -> num_patches = 16
    IN_CHANNELS = 1
    NUM_FEATURES = 32
    EXPANSION = 2
    NUM_LAYERS = 2
    NUM_CLASSES = 8      # change_linear in_features = 2 * NUM_CLASSES
    BATCH = 2

    key = jax.random.PRNGKey(0)
    k_params, k_x, k_x2 = jax.random.split(key, 3)

    params = init_params(
        k_params,
        image_size=IMAGE_SIZE,
        patch_size=PATCH_SIZE,
        in_channels=IN_CHANNELS,
        num_features=NUM_FEATURES,
        expansion_factor=EXPANSION,
        num_layers=NUM_LAYERS,
        num_classes=NUM_CLASSES,
    )

    x = jax.random.normal(k_x, (BATCH, IN_CHANNELS, IMAGE_SIZE, IMAGE_SIZE),
                          dtype=jnp.float32)
    x2 = jax.random.normal(k_x2, (BATCH, IN_CHANNELS, IMAGE_SIZE, IMAGE_SIZE),
                           dtype=jnp.float32)

    out = resmlp_forward(x, x2, params, patch_size=PATCH_SIZE)
    jax.block_until_ready(out)
    assert out.shape == (BATCH, 2)
    print("KERNEL_OK")
</pallas_src>

<mosaic_0001>
module attributes {stable_mosaic.version = 11 : i64} {
  func.func @_fused_resmlp_kernel(%arg0: i32, %arg1: memref<64x16xf32, #tpu.memory_space<vmem>>, %arg2: memref<16x32xf32, #tpu.memory_space<vmem>>, %arg3: memref<1x32xf32, #tpu.memory_space<vmem>>, %arg4: memref<4x64xf32, #tpu.memory_space<vmem>>, %arg5: memref<32x8xf32, #tpu.memory_space<vmem>>, %arg6: memref<1x8xf32, #tpu.memory_space<vmem>>, %arg7: memref<1x8x32xf32, #tpu.memory_space<vmem>>, %arg8: memref<1x64x64xf32, #tpu.memory_space<vmem>>, %arg9: memref<1x64x1xf32, #tpu.memory_space<vmem>>, %arg10: memref<1x32x64xf32, #tpu.memory_space<vmem>>, %arg11: memref<1x1x64xf32, #tpu.memory_space<vmem>>, %arg12: memref<1x64x32xf32, #tpu.memory_space<vmem>>, %arg13: memref<1x1x32xf32, #tpu.memory_space<vmem>>, %arg14: memref<4x8xf32, #tpu.memory_space<vmem>>, %arg15: memref<64x32xf32, #tpu.memory_space<vmem>>) attributes {dimension_semantics = [#tpu.dimension_semantics<arbitrary>], iteration_bounds = array<i64: 2>, scalar_prefetch = 0 : i64, scratch_operands = 1 : i64, tpu.core_type = #tpu.core_type<tc>, window_params = [{pipeline_mode = #tpu.pipeline_mode<synchronous>, transform_indices = @transform_0, window_bounds = array<i64: 64, 16>}, {pipeline_mode = #tpu.pipeline_mode<synchronous>, transform_indices = @transform_1, window_bounds = array<i64: 16, 32>}, {pipeline_mode = #tpu.pipeline_mode<synchronous>, transform_indices = @transform_2, window_bounds = array<i64: 1, 32>}, {pipeline_mode = #tpu.pipeline_mode<synchronous>, transform_indices = @transform_3, window_bounds = array<i64: 4, 64>}, {pipeline_mode = #tpu.pipeline_mode<synchronous>, transform_indices = @transform_4, window_bounds = array<i64: 32, 8>}, {pipeline_mode = #tpu.pipeline_mode<synchronous>, transform_indices = @transform_5, window_bounds = array<i64: 1, 8>}, {transform_indices = @transform_6, window_bounds = array<i64: 1, 8, 32>}, {transform_indices = @transform_7, window_bounds = array<i64: 1, 64, 64>}, {transform_indices = @transform_8, window_bounds = array<i64: 1, 64, 1>}, {transform_indices = @transform_9, window_bounds = array<i64: 1, 32, 64>}, {transform_indices = @transform_10, window_bounds = array<i64: 1, 1, 64>}, {transform_indices = @transform_11, window_bounds = array<i64: 1, 64, 32>}, {transform_indices = @transform_12, window_bounds = array<i64: 1, 1, 32>}, {pipeline_mode = #tpu.pipeline_mode<synchronous>, transform_indices = @transform_13, window_bounds = array<i64: 4, 8>}]} {
    %c0_i32 = arith.constant 0 : i32
    %0 = arith.cmpi eq, %arg0, %c0_i32 : i32
    %1 = arith.extui %0 : i1 to i32
    %c0_i32_0 = arith.constant 0 : i32
    %2 = arith.cmpi ne, %1, %c0_i32_0 : i32
    scf.if %2 {
      %c0_43 = arith.constant 0 : index
      %c0_44 = arith.constant 0 : index
      %97 = vector.load %arg1[%c0_43, %c0_44] : memref<64x16xf32, #tpu.memory_space<vmem>>, vector<64x16xf32>
      %c0_45 = arith.constant 0 : index
      %c0_46 = arith.constant 0 : index
      %98 = vector.load %arg2[%c0_45, %c0_46] : memref<16x32xf32, #tpu.memory_space<vmem>>, vector<16x32xf32>
      %cst_47 = arith.constant dense<0.000000e+00> : vector<64x32xf32>
      %99 = tpu.matmul %97, %98, %cst_47 {dimension_numbers = #tpu.dot_dimension_numbers<[1], [0], [0], [1], [0, 0, 1, 1], [], []>} : vector<64x16xf32>, vector<16x32xf32>, vector<64x32xf32> -> vector<64x32xf32>
      %c0_48 = arith.constant 0 : index
      %c0_49 = arith.constant 0 : index
      %100 = vector.load %arg3[%c0_48, %c0_49] : memref<1x32xf32, #tpu.memory_space<vmem>>, vector<1x32xf32>
      %101 = vector.broadcast %100 : vector<1x32xf32> to vector<64x32xf32>
      %102 = arith.addf %99, %101 : vector<64x32xf32>
      %c0_50 = arith.constant 0 : index
      %c0_51 = arith.constant 0 : index
      %103 = vector.load %arg15[%c0_50, %c0_51] : memref<64x32xf32, #tpu.memory_space<vmem>>, vector<64x32xf32>
      tpu.vector_store %arg15[%c0_50, %c0_51], %102 {strides = array<i32>} : memref<64x32xf32, #tpu.memory_space<vmem>>, vector<64x32xf32>,
    } else {
    }
    %c0 = arith.constant 0 : index
    %c0_1 = arith.constant 0 : index
    %c0_2 = arith.constant 0 : index
    %3 = vector.load %arg7[%c0, %c0_1, %c0_2] : memref<1x8x32xf32, #tpu.memory_space<vmem>>, vector<1x8x32xf32>
    %4 = vector.shape_cast %3 : vector<1x8x32xf32> to vector<8x32xf32>
    %5 = vector.extract_strided_slice %4 {offsets = [0, 0], sizes = [1, 32], strides = [1, 1]} : vector<8x32xf32> to vector<1x32xf32>
    %6 = vector.extract_strided_slice %4 {offsets = [1, 0], sizes = [1, 32], strides = [1, 1]} : vector<8x32xf32> to vector<1x32xf32>
    %7 = vector.extract_strided_slice %4 {offsets = [2, 0], sizes = [1, 32], strides = [1, 1]} : vector<8x32xf32> to vector<1x32xf32>
    %8 = vector.extract_strided_slice %4 {offsets = [3, 0], sizes = [1, 32], strides = [1, 1]} : vector<8x32xf32> to vector<1x32xf32>
    %9 = vector.extract_strided_slice %4 {offsets = [4, 0], sizes = [1, 32], strides = [1, 1]} : vector<8x32xf32> to vector<1x32xf32>
    %10 = vector.extract_strided_slice %4 {offsets = [5, 0], sizes = [1, 32], strides = [1, 1]} : vector<8x32xf32> to vector<1x32xf32>
    %11 = vector.extract_strided_slice %4 {offsets = [6, 0], sizes = [1, 32], strides = [1, 1]} : vector<8x32xf32> to vector<1x32xf32>
    %12 = vector.extract_strided_slice %4 {offsets = [7, 0], sizes = [1, 32], strides = [1, 1]} : vector<8x32xf32> to vector<1x32xf32>
    %c0_3 = arith.constant 0 : index
    %c0_4 = arith.constant 0 : index
    %13 = vector.load %arg15[%c0_3, %c0_4] : memref<64x32xf32, #tpu.memory_space<vmem>>, vector<64x32xf32>
    %14 = vector.broadcast %5 : vector<1x32xf32> to vector<64x32xf32>
    %15 = arith.mulf %14, %13 : vector<64x32xf32>
    %16 = vector.broadcast %6 : vector<1x32xf32> to vector<64x32xf32>
    %17 = arith.addf %15, %16 : vector<64x32xf32>
    %c0_5 = arith.constant 0 : index
    %c0_6 = arith.constant 0 : index
    %c0_7 = arith.constant 0 : index
    %18 = vector.load %arg8[%c0_5, %c0_6, %c0_7] : memref<1x64x64xf32, #tpu.memory_space<vmem>>, vector<1x64x64xf32>
    %19 = vector.shape_cast %18 : vector<1x64x64xf32> to vector<64x64xf32>
    %cst = arith.constant dense<0.000000e+00> : vector<64x32xf32>
    %20 = tpu.matmul %19, %17, %cst {dimension_numbers = #tpu.dot_dimension_numbers<[1], [0], [0], [1], [0, 0, 1, 1], [], []>} : vector<64x64xf32>, vector<64x32xf32>, vector<64x32xf32> -> vector<64x32xf32>
    %c0_8 = arith.constant 0 : index
    %c0_9 = arith.constant 0 : index
    %c0_10 = arith.constant 0 : index
    %21 = vector.load %arg9[%c0_8, %c0_9, %c0_10] : memref<1x64x1xf32, #tpu.memory_space<vmem>>, vector<1x64x1xf32>
    %22 = vector.shape_cast %21 : vector<1x64x1xf32> to vector<64x1xf32>
    %23 = vector.broadcast %22 : vector<64x1xf32> to vector<64x32xf32>
    %24 = arith.addf %20, %23 : vector<64x32xf32>
    %25 = vector.broadcast %7 : vector<1x32xf32> to vector<64x32xf32>
    %26 = arith.mulf %25, %24 : vector<64x32xf32>
    %27 = vector.broadcast %8 : vector<1x32xf32> to vector<64x32xf32>
    %28 = arith.addf %26, %27 : vector<64x32xf32>
    %29 = arith.addf %28, %17 : vector<64x32xf32>
    %30 = vector.broadcast %9 : vector<1x32xf32> to vector<64x32xf32>
    %31 = arith.mulf %30, %29 : vector<64x32xf32>
    %32 = vector.broadcast %10 : vector<1x32xf32> to vector<64x32xf32>
    %33 = arith.addf %31, %32 : vector<64x32xf32>
    %c0_11 = arith.constant 0 : index
    %c0_12 = arith.constant 0 : index
    %c0_13 = arith.constant 0 : index
    %34 = vector.load %arg10[%c0_11, %c0_12, %c0_13] : memref<1x32x64xf32, #tpu.memory_space<vmem>>, vector<1x32x64xf32>
    %35 = vector.shape_cast %34 : vector<1x32x64xf32> to vector<32x64xf32>
    %cst_14 = arith.constant dense<0.000000e+00> : vector<64x64xf32>
    %36 = tpu.matmul %33, %35, %cst_14 {dimension_numbers = #tpu.dot_dimension_numbers<[1], [0], [0], [1], [0, 0, 1, 1], [], []>} : vector<64x32xf32>, vector<32x64xf32>, vector<64x64xf32> -> vector<64x64xf32>
    %c0_15 = arith.constant 0 : index
    %c0_16 = arith.constant 0 : index
    %c0_17 = arith.constant 0 : index
    %37 = vector.load %arg11[%c0_15, %c0_16, %c0_17] : memref<1x1x64xf32, #tpu.memory_space<vmem>>, vector<1x1x64xf32>
    %38 = vector.shape_cast %37 : vector<1x1x64xf32> to vector<1x64xf32>
    %39 = vector.broadcast %38 : vector<1x64xf32> to vector<64x64xf32>
    %40 = arith.addf %36, %39 : vector<64x64xf32>
    %cst_18 = arith.constant 5.000000e-01 : f32
    %41 = vector.broadcast %cst_18 : f32 to vector<64x64xf32>
    %42 = arith.mulf %41, %40 : vector<64x64xf32>
    %cst_19 = arith.constant 0.707106769 : f32
    %43 = vector.broadcast %cst_19 : f32 to vector<64x64xf32>
    %44 = arith.mulf %40, %43 : vector<64x64xf32>
    %45 = math.absf %44 : vector<64x64xf32>
    %cst_20 = arith.constant 0.327591091 : f32
    %46 = vector.broadcast %cst_20 : f32 to vector<64x64xf32>
    %47 = arith.mulf %46, %45 : vector<64x64xf32>
    %cst_21 = arith.constant 1.000000e+00 : f32
    %48 = vector.broadcast %cst_21 : f32 to vector<64x64xf32>
    %49 = arith.addf %48, %47 : vector<64x64xf32>
    %cst_22 = arith.constant 1.000000e+00 : f32
    %50 = vector.broadcast %cst_22 : f32 to vector<64x64xf32>
    %51 = arith.divf %50, %49 : vector<64x64xf32>
    %cst_23 = arith.constant 1.06140542 : f32
    %52 = vector.broadcast %cst_23 : f32 to vector<64x64xf32>
    %53 = arith.mulf %51, %52 : vector<64x64xf32>
    %cst_24 = arith.constant -1.45315206 : f32
    %54 = vector.broadcast %cst_24 : f32 to vector<64x64xf32>
    %55 = arith.addf %54, %53 : vector<64x64xf32>
    %56 = arith.mulf %51, %55 : vector<64x64xf32>
    %cst_25 = arith.constant 1.42141378 : f32
    %57 = vector.broadcast %cst_25 : f32 to vector<64x64xf32>
    %58 = arith.addf %57, %56 : vector<64x64xf32>
    %59 = arith.mulf %51, %58 : vector<64x64xf32>
    %cst_26 = arith.constant -0.284496725 : f32
    %60 = vector.broadcast %cst_26 : f32 to vector<64x64xf32>
    %61 = arith.addf %60, %59 : vector<64x64xf32>
    %62 = arith.mulf %51, %61 : vector<64x64xf32>
    %cst_27 = arith.constant 0.254829586 : f32
    %63 = vector.broadcast %cst_27 : f32 to vector<64x64xf32>
    %64 = arith.addf %63, %62 : vector<64x64xf32>
    %65 = arith.mulf %51, %64 : vector<64x64xf32>
    %cst_28 = arith.constant 0.000000e+00 : f32
    %66 = vector.broadcast %cst_28 : f32 to vector<64x64xf32>
    %67 = arith.subf %66, %45 : vector<64x64xf32>
    %68 = arith.mulf %67, %45 : vector<64x64xf32>
    %69 = math.exp %68 : vector<64x64xf32>
    %70 = arith.mulf %65, %69 : vector<64x64xf32>
    %cst_29 = arith.constant 1.000000e+00 : f32
    %71 = vector.broadcast %cst_29 : f32 to vector<64x64xf32>
    %72 = arith.subf %71, %70 : vector<64x64xf32>
    %cst_30 = arith.constant 0.000000e+00 : f32
    %73 = vector.broadcast %cst_30 : f32 to vector<64x64xf32>
    %74 = arith.cmpf oge, %44, %73 : vector<64x64xf32>
    %cst_31 = arith.constant 0.000000e+00 : f32
    %75 = vector.broadcast %cst_31 : f32 to vector<64x64xf32>
    %76 = arith.subf %75, %72 : vector<64x64xf32>
    %77 = arith.select %74, %72, %76 : vector<64x64xi1>, vector<64x64xf32>
    %cst_32 = arith.constant 1.000000e+00 : f32
    %78 = vector.broadcast %cst_32 : f32 to vector<64x64xf32>
    %79 = arith.addf %78, %77 : vector<64x64xf32>
    %80 = arith.mulf %42, %79 : vector<64x64xf32>
    %c0_33 = arith.constant 0 : index
    %c0_34 = arith.constant 0 : index
    %c0_35 = arith.constant 0 : index
    %81 = vector.load %arg12[%c0_33, %c0_34, %c0_35] : memref<1x64x32xf32, #tpu.memory_space<vmem>>, vector<1x64x32xf32>
    %82 = vector.shape_cast %81 : vector<1x64x32xf32> to vector<64x32xf32>
    %cst_36 = arith.constant dense<0.000000e+00> : vector<64x32xf32>
    %83 = tpu.matmul %80, %82, %cst_36 {dimension_numbers = #tpu.dot_dimension_numbers<[1], [0], [0], [1], [0, 0, 1, 1], [], []>} : vector<64x64xf32>, vector<64x32xf32>, vector<64x32xf32> -> vector<64x32xf32>
    %c0_37 = arith.constant 0 : index
    %c0_38 = arith.constant 0 : index
    %c0_39 = arith.constant 0 : index
    %84 = vector.load %arg13[%c0_37, %c0_38, %c0_39] : memref<1x1x32xf32, #tpu.memory_space<vmem>>, vector<1x1x32xf32>
    %85 = vector.shape_cast %84 : vector<1x1x32xf32> to vector<1x32xf32>
    %86 = vector.broadcast %85 : vector<1x32xf32> to vector<64x32xf32>
    %87 = arith.addf %83, %86 : vector<64x32xf32>
    %88 = vector.broadcast %11 : vector<1x32xf32> to vector<64x32xf32>
    %89 = arith.mulf %88, %87 : vector<64x32xf32>
    %90 = vector.broadcast %12 : vector<1x32xf32> to vector<64x32xf32>
    %91 = arith.addf %89, %90 : vector<64x32xf32>
    %92 = arith.addf %91, %33 : vector<64x32xf32>
    %c0_40 = arith.constant 0 : index
    %c0_41 = arith.constant 0 : index
    %93 = vector.load %arg15[%c0_40, %c0_41] : memref<64x32xf32, #tpu.memory_space<vmem>>, vector<64x32xf32>
    tpu.vector_store %arg15[%c0_40, %c0_41], %92 {strides = array<i32>} : memref<64x32xf32, #tpu.memory_space<vmem>>, vector<64x32xf32>,
    %c1_i32 = arith.constant 1 : i32
    %94 = arith.cmpi eq, %arg0, %c1_i32 : i32
    %95 = arith.extui %94 : i1 to i32
    %c0_i32_42 = arith.constant 0 : i32
    %96 = arith.cmpi ne, %95, %c0_i32_42 : i32
    scf.if %96 {
      %c0_43 = arith.constant 0 : index
      %c0_44 = arith.constant 0 : index
      %97 = vector.load %arg4[%c0_43, %c0_44] : memref<4x64xf32, #tpu.memory_space<vmem>>, vector<4x64xf32>
      %c0_45 = arith.constant 0 : index
      %c0_46 = arith.constant 0 : index
      %98 = vector.load %arg15[%c0_45, %c0_46] : memref<64x32xf32, #tpu.memory_space<vmem>>, vector<64x32xf32>
      %cst_47 = arith.constant dense<0.000000e+00> : vector<4x32xf32>
      %99 = tpu.matmul %97, %98, %cst_47 {dimension_numbers = #tpu.dot_dimension_numbers<[1], [0], [0], [1], [0, 0, 1, 1], [], []>} : vector<4x64xf32>, vector<64x32xf32>, vector<4x32xf32> -> vector<4x32xf32>
      %c0_48 = arith.constant 0 : index
      %c0_49 = arith.constant 0 : index
      %100 = vector.load %arg5[%c0_48, %c0_49] : memref<32x8xf32, #tpu.memory_space<vmem>>, vector<32x8xf32>
      %cst_50 = arith.constant dense<0.000000e+00> : vector<4x8xf32>
      %101 = tpu.matmul %99, %100, %cst_50 {dimension_numbers = #tpu.dot_dimension_numbers<[1], [0], [0], [1], [0, 0, 1, 1], [], []>} : vector<4x32xf32>, vector<32x8xf32>, vector<4x8xf32> -> vector<4x8xf32>
      %c0_51 = arith.constant 0 : index
      %c0_52 = arith.constant 0 : index
      %102 = vector.load %arg6[%c0_51, %c0_52] : memref<1x8xf32, #tpu.memory_space<vmem>>, vector<1x8xf32>
      %103 = vector.broadcast %102 : vector<1x8xf32> to vector<4x8xf32>
      %104 = arith.addf %101, %103 : vector<4x8xf32>
      %c0_53 = arith.constant 0 : index
      %c0_54 = arith.constant 0 : index
      %105 = vector.load %arg14[%c0_53, %c0_54] : memref<4x8xf32, #tpu.memory_space<vmem>>, vector<4x8xf32>
      tpu.vector_store %arg14[%c0_53, %c0_54], %104 {strides = array<i32>} : memref<4x8xf32, #tpu.memory_space<vmem>>, vector<4x8xf32>,
    } else {
    }
    return
  }
  func.func @transform_0(%arg0: i32) -> (i32, i32) {
    %c0_i32 = arith.constant 0 : i32
    %c0_i32_0 = arith.constant 0 : i32
    %c0_i32_1 = arith.constant 0 : i32
    return %c0_i32, %c0_i32_0 : i32, i32
  }
  func.func @transform_1(%arg0: i32) -> (i32, i32) {
    %c0_i32 = arith.constant 0 : i32
    %c0_i32_0 = arith.constant 0 : i32
    %c0_i32_1 = arith.constant 0 : i32
    return %c0_i32, %c0_i32_0 : i32, i32
  }
  func.func @transform_2(%arg0: i32) -> (i32, i32) {
    %c0_i32 = arith.constant 0 : i32
    %c0_i32_0 = arith.constant 0 : i32
    %c0_i32_1 = arith.constant 0 : i32
    return %c0_i32, %c0_i32_0 : i32, i32
  }
  func.func @transform_3(%arg0: i32) -> (i32, i32) {
    %c0_i32 = arith.constant 0 : i32
    %c0_i32_0 = arith.constant 0 : i32
    %c0_i32_1 = arith.constant 0 : i32
    return %c0_i32, %c0_i32_0 : i32, i32
  }
  func.func @transform_4(%arg0: i32) -> (i32, i32) {
    %c0_i32 = arith.constant 0 : i32
    %c0_i32_0 = arith.constant 0 : i32
    %c0_i32_1 = arith.constant 0 : i32
    return %c0_i32, %c0_i32_0 : i32, i32
  }
  func.func @transform_5(%arg0: i32) -> (i32, i32) {
    %c0_i32 = arith.constant 0 : i32
    %c0_i32_0 = arith.constant 0 : i32
    %c0_i32_1 = arith.constant 0 : i32
    return %c0_i32, %c0_i32_0 : i32, i32
  }
  func.func @transform_6(%arg0: i32) -> (i32, i32, i32) {
    %c0_i32 = arith.constant 0 : i32
    %c0_i32_0 = arith.constant 0 : i32
    %c0_i32_1 = arith.constant 0 : i32
    return %arg0, %c0_i32, %c0_i32_0 : i32, i32, i32
  }
  func.func @transform_7(%arg0: i32) -> (i32, i32, i32) {
    %c0_i32 = arith.constant 0 : i32
    %c0_i32_0 = arith.constant 0 : i32
    %c0_i32_1 = arith.constant 0 : i32
    return %arg0, %c0_i32, %c0_i32_0 : i32, i32, i32
  }
  func.func @transform_8(%arg0: i32) -> (i32, i32, i32) {
    %c0_i32 = arith.constant 0 : i32
    %c0_i32_0 = arith.constant 0 : i32
    %c0_i32_1 = arith.constant 0 : i32
    return %arg0, %c0_i32, %c0_i32_0 : i32, i32, i32
  }
  func.func @transform_9(%arg0: i32) -> (i32, i32, i32) {
    %c0_i32 = arith.constant 0 : i32
    %c0_i32_0 = arith.constant 0 : i32
    %c0_i32_1 = arith.constant 0 : i32
    return %arg0, %c0_i32, %c0_i32_0 : i32, i32, i32
  }
  func.func @transform_10(%arg0: i32) -> (i32, i32, i32) {
    %c0_i32 = arith.constant 0 : i32
    %c0_i32_0 = arith.constant 0 : i32
    %c0_i32_1 = arith.constant 0 : i32
    return %arg0, %c0_i32, %c0_i32_0 : i32, i32, i32
  }
  func.func @transform_11(%arg0: i32) -> (i32, i32, i32) {
    %c0_i32 = arith.constant 0 : i32
    %c0_i32_0 = arith.constant 0 : i32
    %c0_i32_1 = arith.constant 0 : i32
    return %arg0, %c0_i32, %c0_i32_0 : i32, i32, i32
  }
  func.func @transform_12(%arg0: i32) -> (i32, i32, i32) {
    %c0_i32 = arith.constant 0 : i32
    %c0_i32_0 = arith.constant 0 : i32
    %c0_i32_1 = arith.constant 0 : i32
    return %arg0, %c0_i32, %c0_i32_0 : i32, i32, i32
  }
  func.func @transform_13(%arg0: i32) -> (i32, i32) {
    %c0_i32 = arith.constant 0 : i32
    %c0_i32_0 = arith.constant 0 : i32
    %c0_i32_1 = arith.constant 0 : i32
    return %c0_i32, %c0_i32_0 : i32, i32
  }
}

</mosaic_0001>

<bundles_post_ra>
// kernel: resmlp_forward.1
= control target key start
LH: loop header
LB: loop body
LE: loop exit
PB: predicated region body
PF: predicated region fallthrough
CT: control target
= control target key end

     0   :  { %s2168_s25 = smov 0   ;;  %s2582_s0 = inlined_call_operand.vmem [shape: f32[64,16], index: 0, kind: input, shape index: {}]   ;;  %s2583_s1 = inlined_call_operand.vmem [shape: f32[16,32], index: 1, kind: input, shape index: {}]   ;;  %s2584_s2 = inlined_call_operand.vmem [shape: f32[1,32], index: 2, kind: input, shape index: {}]   ;;  %s2585_s3 = inlined_call_operand.vmem [shape: f32[4,64], index: 3, kind: input, shape index: {}]   ;;  %s2586_s4 = inlined_call_operand.vmem [shape: f32[32,8], index: 4, kind: input, shape index: {}]   ;;  %s2587_s5 = inlined_call_operand.vmem [shape: f32[1,8], index: 5, kind: input, shape index: {}]   ;;  %s2588_s6 = inlined_call_operand.vmem [shape: f32[2,8,32], index: 6, kind: input, shape index: {}]   ;;  %s2589_s7 = inlined_call_operand.vmem [shape: f32[2,64,64], index: 7, kind: input, shape index: {}]   ;;  %s2590_s8 = inlined_call_operand.vmem [shape: f32[2,64,1], index: 8, kind: input, shape index: {}]   ;;  %s2591_s9 = inlined_call_operand.vmem [shape: f32[2,32,64], index: 9, kind: input, shape index: {}]   ;;  %s2592_s10 = inlined_call_operand.vmem [shape: f32[2,1,64], index: 10, kind: input, shape index: {}]   ;;  %s2593_s11 = inlined_call_operand.vmem [shape: f32[2,64,32], index: 11, kind: input, shape index: {}]   ;;  %s2594_s12 = inlined_call_operand.vmem [shape: f32[2,1,32], index: 12, kind: input, shape index: {}]   ;;  %s2595_s13 = inlined_call_operand.vmem [shape: f32[4,8], index: 13, kind: output, shape index: {}]  }
   0x1   :  { %2597 = sst [smem:[#allocation4_spill]] %s2588_s6 }
   0x2   :  { %2598 = sst [smem:[#allocation5_spill]] %s2589_s7 }
   0x3   :  { %2599 = sst [smem:[#allocation6_spill]] %s2595_s13 }
   0x4 LB: > { %2600 = sst [smem:[#allocation3_spill]] %s2093_s25  ;;  %s2174_s26 = sadd.s32 4294967295, %s2093_s25   ;;  %s2093_s25 = sphi %s2168_s25, %s23_s25  }
   0x5   : > { %p1776_p0 = scmp.ge.s32.totalorder %s2093_s25, 1  ;;  %p437_p1 = scmp.lt.s32.totalorder %s2093_s25, 3 }
   0x7   : > { %p438_p2 = pnand %p1776_p0, %p437_p1 }
   0x8   : > { %p501_p3 = scmp.lt.s32.totalorder (!%p438_p2), %s2174_s26, 1  ;;  %s2601_s6 = sld [smem:[#allocation4_spill]] (!%p438_p2) }
   0x9   : > { %441 = sbr.rel (%p438_p2) target bundleno = 1351 (0x547), region = 72  ;;  %s2602_s7 = sld [smem:[#allocation5_spill]] (!%p438_p2) }
   0xa   : > { %p1786_p4 = scmp.ne.s32.totalorder (!%p438_p2), %s2174_s26, 0 }
   0xe   : > { %s2180_s27 = scalar_select %p501_p3, %s2174_s26, 1 }
  0x10   : > { %s1777_s28 = sshll.u32 %s2180_s27, 3  ;;  %s1828_s29 = sshll.u32 %s2180_s27, 6 }
  0x11   : > { %s2187_s15 = scalar_lea.vmem %s2601_s6, %s1777_s28  ;;  %s2192_s18 = scalar_lea.vmem %s2602_s7, %s1828_s29 }
  0x12   : > { %s2197_s21 = scalar_lea.vmem %s2590_s8, %s1828_s29  ;;  %s1830_s22 = sshll.u32 %s2180_s27, 5 }
  0x13   : > { %s2203_s25 = scalar_lea.vmem %s2591_s9, %s1830_s22  ;;  %s522_s28 = scalar_lea.vmem %s2592_s10, %s2180_s27 }
  0x14   : > { %s2212_s16 = scalar_lea.vmem %s2593_s11, %s1828_s29  ;;  %s530_s19 = scalar_lea.vmem %s2594_s12, %s2180_s27 }
  0x15   : > { %534 = sbr.rel (%p1786_p4) target bundleno = 234 (0xea), region = 76 }
  0x1a   : > { %v544_v0 = vld [vmem:[%s2583_s1 + $0x8] sm:$0xff]  ;;  %v543_v1 = vld [vmem:[%s2583_s1] sm:$0xff]  ;;  %vm552_vm0 = vcmask 130048   ;;  %v537_v6 = vld [vmem:[%s2582_s0 + $0x10] sm:$0xff]  ;;  %vm682_vm1 = vcmask 261120  }
  0x1b   : > { %1900 = vmatprep.subr.mxu0 %v544_v0  ;;  %2022 = vmatprep.subr.mxu1 %v544_v0  ;;  %v535_v2 = vld [vmem:[%s2582_s0] sm:$0xff]  ;;  %v536_v4 = vld [vmem:[%s2582_s0 + $0x8] sm:$0xff]  ;;  %v541_v7 = vld [vmem:[%s2582_s0 + $0x30] sm:$0xff] }
  0x1c   : > { %1901 = vmatpush3.msra.mxu0 %v544_v0  ;;  %2024 = vmatpush3.msra.mxu1 %v544_v0  ;;  %v539_v3 = vld [vmem:[%s2582_s0 + $0x20] sm:$0xff]  ;;  %v540_v5 = vld [vmem:[%s2582_s0 + $0x28] sm:$0xff]  ;;  %v538_v8 = vld [vmem:[%s2582_s0 + $0x18] sm:$0xff] }
  0x1d   : > { %1902 = vmatprep.subr.mxu0 %v543_v1  ;;  %2023 = vmatprep.subr.mxu1 %v543_v1  ;;  %v542_v9 = vld [vmem:[%s2582_s0 + $0x38] sm:$0xff]  ;;  %v1787_v10 = vld [vmem:[%s2584_s2] ss:$0 sm:$0xff] }
  0x1e   : > { %1903 = vmatpush3.msra.mxu0 %v543_v1  ;;  %2025 = vmatpush3.msra.mxu1 %v543_v1 }
  0x1f   : > { %1904 = vmatprep.mubr.msk.f32.mxu0 %vm552_vm0, %v535_v2  ;;  %1910 = vmatprep.mubr.msk.f32.mxu1 %vm552_vm0, %v539_v3 }
  0x20   : > { %1905 = vmatmul.mubr.msk.f32.vlgmr.msra.gmra.mxu0 %vm552_vm0, %v536_v4  ;;  %1911 = vmatmul.mubr.msk.f32.vlgmr.msra.gmra.mxu1 %vm552_vm0, %v540_v5 }
  0x21   : > { %1907 = vmatprep.mubr.msk.f32.mxu0 %vm552_vm0, %v537_v6  ;;  %1913 = vmatprep.mubr.msk.f32.mxu1 %vm552_vm0, %v541_v7 }
  0x24   : > { %1908 = vmatmul.mubr.msk.f32.gmra.mxu0 %vm552_vm0, %v538_v8  ;;  %1914 = vmatmul.mubr.msk.f32.gmra.mxu1 %vm552_vm0, %v542_v9 }
  0xe0   : > { %v1906_v11 = vpop.f32.mrf.mxu0  ;;  %v1912_v12 = vpop.f32.mrf.mxu1 }
  0xe1   : > { %v649_v13 = vadd.f32 %v1906_v11, %v1787_v10  ;;  %v669_v14 = vadd.f32 %v1912_v12, %v1787_v10 }
  0xe2   : > { %v643_v15 = vpop.f32.mrf.mxu0  ;;  %v663_v16 = vpop.f32.mrf.mxu1 }
  0xe3   : > { %684 = vst.msk [vmem:[#allocation2 + $0x8] sm:$0xff] %vm682_vm1, %v649_v13  ;;  %688 = vst.msk [vmem:[#allocation2 + $0x28] sm:$0xff] %vm682_vm1, %v669_v14  ;;  %v644_v17 = vadd.f32 %v1787_v10, %v643_v15  ;;  %v664_v18 = vadd.f32 %v1787_v10, %v663_v16 }
  0xe4   : > { %v1909_v19 = vpop.f32.mrf.mxu0  ;;  %v1915_v20 = vpop.f32.mrf.mxu1 }
  0xe5   : > { %683 = vst.msk [vmem:[#allocation2] sm:$0xff] %vm682_vm1, %v644_v17  ;;  %687 = vst.msk [vmem:[#allocation2 + $0x20] sm:$0xff] %vm682_vm1, %v664_v18  ;;  %v659_v21 = vadd.f32 %v1909_v19, %v1787_v10  ;;  %v679_v22 = vadd.f32 %v1915_v20, %v1787_v10 }
  0xe6   : > { %v653_v23 = vpop.f32.mrf.mxu0  ;;  %v673_v24 = vpop.f32.mrf.mxu1 }
  0xe7   : > { %686 = vst.msk [vmem:[#allocation2 + $0x18] sm:$0xff] %vm682_vm1, %v659_v21  ;;  %690 = vst.msk [vmem:[#allocation2 + $0x38] sm:$0xff] %vm682_vm1, %v679_v22  ;;  %v654_v25 = vadd.f32 %v1787_v10, %v653_v23  ;;  %v674_v26 = vadd.f32 %v1787_v10, %v673_v24 }
  0xe9   : > { %685 = vst.msk [vmem:[#allocation2 + $0x10] sm:$0xff] %vm682_vm1, %v654_v25  ;;  %689 = vst.msk [vmem:[#allocation2 + $0x30] sm:$0xff] %vm682_vm1, %v674_v26 }
  0xea PF: > { %v700_v27 = vlaneseq  ;;  %vm780_vm2 = vcmask 523264   ;;  %v2095_v28 = vmov 0   ;;  %v2271_v30 = vld [vmem:[%s2187_s15] sm:$0xff]  ;;  %v697_v36 = vld [vmem:[#allocation2 + $0x28] sm:$0xff]  ;;  %v734_v40 = vld [vmem:[%s2197_s21 + $0x10] sm:$0xff]  ;;  %vm977_vm3 = vcmask 261120  }
  0xeb   : > { %2053 = vset.pattern.permute.xlu0 %v2095_v28  ;;  %2054 = vset.pattern.permute.xlu1 %v2095_v28  ;;  %v724_v31 = vld [vmem:[%s2192_s18] sm:$0xff]  ;;  %v733_v42 = vld [vmem:[%s2197_s21 + $0x8] sm:$0xff]  ;;  %v735_v46 = vld [vmem:[%s2197_s21 + $0x18] sm:$0xff]  ;;  %p1822_p5 = scmp.ne.s32.totalorder %s2174_s26, 1 }
  0xec   : > { %v2268_v29 = vshrl.u32 %v700_v27, 7  ;;  %1932 = vmatprep.mubr.msk.f32.mxu0 %vm780_vm2, %v724_v31  ;;  %v732_v37 = vld [vmem:[%s2197_s21] sm:$0xff]  ;;  %752 = vperm.xlu1 %2054, %v734_v40   ;;  %v737_v55 = vld [vmem:[%s2197_s21 + $0x28] sm:$0xff]  ;;  %v738_v60 = vld [vmem:[%s2197_s21 + $0x30] sm:$0xff]  ;;  %s2603_s14 = sld [smem:[#allocation6_spill]] (!%p1822_p5) }
  0xed   : > { %742 = vperm.xlu0 %2053, %v732_v37   ;;  %v696_v41 = vld [vmem:[#allocation2 + $0x20] sm:$0xff]  ;;  %v693_v56 = vld [vmem:[#allocation2 + $0x8] sm:$0xff]  ;;  %v739_v63 = vld [vmem:[%s2197_s21 + $0x38] sm:$0xff] }
  0xee   : > { %v699_v32 = vld [vmem:[#allocation2 + $0x38] sm:$0xff]  ;;  %v702_v33 = vsub.s32 0, %v2268_v29  ;;  %v714_v34 = vsub.s32 1, %v2268_v29  ;;  %v736_v52 = vld [vmem:[%s2197_s21 + $0x20] sm:$0xff]  ;;  %v725_v4 = vld [vmem:[%s2192_s18 + $0x8] sm:$0xff]  ;;  %v912_v17 = vsub.s32 2, %v2268_v29 }
  0xef   : > { %v695_v47 = vld [vmem:[#allocation2 + $0x18] sm:$0xff]  ;;  %v692_v59 = vld [vmem:[#allocation2] sm:$0xff]  ;;  %v726_v5 = vld [vmem:[%s2192_s18 + $0x10] sm:$0xff]  ;;  %v924_v18 = vsub.s32 3, %v2268_v29  ;;  %v944_v25 = vsub.s32 4, %v2268_v29  ;;  %v956_v37 = vsub.s32 5, %v2268_v29 }
  0xf0   : > { %v698_v35 = vld [vmem:[#allocation2 + $0x30] sm:$0xff]  ;;  %v703_v38 = vrot.slane %v2271_v30, %v702_v33  ;;  %v715_v39 = vrot.slane %v2271_v30, %v714_v34  ;;  %757 = vperm.xlu1 %2054, %v735_v46   ;;  %v727_v6 = vld [vmem:[%s2192_s18 + $0x18] sm:$0xff]  ;;  %v728_v7 = vld [vmem:[%s2192_s18 + $0x20] sm:$0xff]  ;;  %v913_v19 = vrot.slane %v2271_v30, %v912_v17 }
  0xf1   : > { %747 = vperm.xlu0 %2053, %v733_v42   ;;  %v694_v51 = vld [vmem:[#allocation2 + $0x10] sm:$0xff]  ;;  %v729_v8 = vld [vmem:[%s2192_s18 + $0x28] sm:$0xff]  ;;  %v731_v10 = vld [vmem:[%s2192_s18 + $0x38] sm:$0xff]  ;;  %v925_v24 = vrot.slane %v2271_v30, %v924_v18 }
  0xf2   : > { %v711_v43 = vmul.f32 %v703_v38, %v699_v32  ;;  %v710_v44 = vmul.f32 %v703_v38, %v698_v35  ;;  %v709_v45 = vmul.f32 %v703_v38, %v697_v36  ;;  %v708_v50 = vmul.f32 %v703_v38, %v696_v41  ;;  %v730_v9 = vld [vmem:[%s2192_s18 + $0x30] sm:$0xff]  ;;  %v969_v11 = vld [vmem:[%s2203_s25 + $0x18] sm:$0xff]  ;;  %v967_v13 = vld [vmem:[%s2203_s25 + $0x8] sm:$0xff] }
  0xf3   : > { %v707_v54 = vmul.f32 %v703_v38, %v695_v47  ;;  %v706_v58 = vmul.f32 %v703_v38, %v694_v51  ;;  %v705_v62 = vmul.f32 %v703_v38, %v693_v56  ;;  %v704_v1 = vmul.f32 %v703_v38, %v692_v59  ;;  %1944 = vmatprep.subr.mxu1 %v969_v11  ;;  %v968_v12 = vld [vmem:[%s2203_s25 + $0x10] sm:$0xff]  ;;  %v966_v14 = vld [vmem:[%s2203_s25] sm:$0xff] }
  0xf4   : > { %v2283_v48 = vadd.f32 %v715_v39, %v711_v43  ;;  %v2285_v49 = vadd.f32 %v715_v39, %v710_v44  ;;  %v2289_v53 = vadd.f32 %v715_v39, %v709_v45  ;;  %v2294_v57 = vadd.f32 %v715_v39, %v708_v50  ;;  %767 = vperm.xlu1 %2054, %v737_v55  }
  0xf5   : > { %762 = vperm.xlu0 %2053, %v736_v52   ;;  %v2299_v61 = vadd.f32 %v715_v39, %v707_v54  ;;  %v2304_v0 = vadd.f32 %v715_v39, %v706_v58  ;;  %v717_v2 = vadd.f32 %v715_v39, %v705_v62  ;;  %v2310_v3 = vadd.f32 %v715_v39, %v704_v1 }
  0xf6   : > { %1916 = vmatprep.subr.mxu0 %v2283_v48  ;;  %1945 = vmatpush3.msra.mxu1 %v969_v11  ;;  %v945_v35 = vrot.slane %v2271_v30, %v944_v25  ;;  %v957_v54 = vrot.slane %v2271_v30, %v956_v37  ;;  %v1330_v25 = vld [vmem:[%s2212_s16 + $0x38] sm:$0xff] }
  0xf7   : > { %1917 = vmatpush3.msra.mxu0 %v2283_v48  ;;  %1946 = vmatprep.subr.mxu1 %v968_v12 }
  0xf8   : > { %1918 = vmatprep.subr.mxu0 %v2285_v49  ;;  %777 = vperm.xlu1 %2054, %v739_v63  }
  0xf9   : > { %1919 = vmatpush3.msra.mxu0 %v2285_v49  ;;  %772 = vperm.xlu0 %2053, %v738_v60  }
  0xfa   : > { %1920 = vmatprep.subr.mxu0 %v2289_v53  ;;  %1947 = vmatpush3.msra.mxu1 %v968_v12 }
  0xfb   : > { %1921 = vmatpush3.msra.mxu0 %v2289_v53  ;;  %1948 = vmatprep.subr.mxu1 %v967_v13 }
  0xfc   : > { %1922 = vmatprep.subr.mxu0 %v2294_v57  ;;  %1949 = vmatpush3.msra.mxu1 %v967_v13 }
  0xfd   : > { %1923 = vmatpush3.msra.mxu0 %v2294_v57  ;;  %1950 = vmatprep.subr.mxu1 %v966_v14 }
  0xfe   : > { %1924 = vmatprep.subr.mxu0 %v2299_v61  ;;  %1951 = vmatpush3.msra.mxu1 %v966_v14 }
  0xff   : > { %1925 = vmatpush3.msra.mxu0 %v2299_v61  ;;  %2026 = vmatprep.subr.mxu1 %v1330_v25 }
 0x100   : > { %1926 = vmatprep.subr.mxu0 %v2304_v0 }
 0x101   : > { %1927 = vmatpush3.msra.mxu0 %v2304_v0 }
 0x102   : > { %1928 = vmatprep.subr.mxu0 %v717_v2 }
 0x103   : > { %1929 = vmatpush3.msra.mxu0 %v717_v2 }
 0x104   : > { %1930 = vmatprep.subr.mxu0 %v2310_v3 }
 0x105   : > { %1931 = vmatpush3.msra.mxu0 %v2310_v3 }
 0x106   : > { %1933 = vmatmul.mubr.msk.f32.vlgmr.msra.gmra.mxu0 %vm780_vm2, %v725_v4  ;;  %1964 = vmatprep.subr.mxu0 %v1330_v25 }
 0x107   : > { %1935 = vmatprep.mubr.msk.f32.mxu0 %vm780_vm2, %v726_v5  ;;  %1965 = vmatpush3.msra.mxu0 %v1330_v25 }
 0x10a   : > { %1936 = vmatmul.mubr.msk.f32.gmra.mxu0 %vm780_vm2, %v727_v6 }
 0x10b   : > { %1938 = vmatprep.mubr.msk.f32.mxu0 %vm780_vm2, %v728_v7 }
 0x10e   : > { %1939 = vmatmul.mubr.msk.f32.gmra.mxu0 %vm780_vm2, %v729_v8 }
 0x10f   : > { %1941 = vmatprep.mubr.msk.f32.mxu0 %vm780_vm2, %v730_v9 }
 0x112   : > { %1942 = vmatmul.mubr.msk.f32.gmra.mxu0 %vm780_vm2, %v731_v10 }
 0x167   : > { %v753_v16 = vpop.permute.xlu1 %752 }
 0x168   : > { %v743_v15 = vpop.permute.xlu0 %742 }
 0x16b   : > { %v758_v22 = vpop.permute.xlu1 %757 }
 0x16c   : > { %v748_v20 = vpop.permute.xlu0 %747 }
 0x16f   : > { %v768_v38 = vpop.permute.xlu1 %767 }
 0x170   : > { %v763_v43 = vpop.permute.xlu0 %762 }
 0x173   : > { %v778_v63 = vpop.permute.xlu1 %777 }
 0x174   : > { %v773_v5 = vpop.permute.xlu0 %772 }
 0x1c6   : > { %v1934_v21 = vpop.f32.mrf.mxu0 }
 0x1c7   : > { %v877_v23 = vadd.f32 %v1934_v21, %v748_v20 }
 0x1c8   : > { %v871_v26 = vpop.f32.mrf.mxu0 }
 0x1c9   : > { %v915_v27 = vmul.f32 %v913_v19, %v877_v23  ;;  %v872_v28 = vadd.f32 %v871_v26, %v743_v15  ;;  %v1329_v26 = vld [vmem:[%s2212_s16 + $0x30] sm:$0xff] }
 0x1ca   : > { %v1937_v31 = vpop.f32.mrf.mxu0  ;;  %1966 = vmatprep.subr.mxu0 %v1329_v26 }
 0x1cb   : > { %v927_v32 = vadd.f32 %v925_v24, %v915_v27  ;;  %v914_v33 = vmul.f32 %v913_v19, %v872_v28  ;;  %v887_v34 = vadd.f32 %v1937_v31, %v758_v22  ;;  %1967 = vmatpush3.msra.mxu0 %v1329_v26  ;;  %v1328_v27 = vld [vmem:[%s2212_s16 + $0x28] sm:$0xff]  ;;  %v1327_v28 = vld [vmem:[%s2212_s16 + $0x20] sm:$0xff]  ;;  %v1326_v31 = vld [vmem:[%s2212_s16 + $0x18] sm:$0xff] }
 0x1cc   : > { %v881_v36 = vpop.f32.mrf.mxu0  ;;  %1968 = vmatprep.subr.mxu0 %v1328_v27 }
 0x1cd   : > { %v935_v39 = vadd.f32 %v927_v32, %v717_v2  ;;  %v926_v40 = vadd.f32 %v925_v24, %v914_v33  ;;  %v917_v41 = vmul.f32 %v913_v19, %v887_v34  ;;  %v882_v42 = vadd.f32 %v881_v36, %v753_v16  ;;  %1969 = vmatpush3.msra.mxu0 %v1328_v27  ;;  %v1325_v32 = vld [vmem:[%s2212_s16 + $0x10] sm:$0xff]  ;;  %v1324_v33 = vld [vmem:[%s2212_s16 + $0x8] sm:$0xff]  ;;  %v1323_v34 = vld [vmem:[%s2212_s16] sm:$0xff] }
 0x1ce   : > { %v1940_v44 = vpop.f32.mrf.mxu0  ;;  %1970 = vmatprep.subr.mxu0 %v1327_v28 }
 0x1cf   : > { %v929_v45 = vadd.f32 %v925_v24, %v917_v41  ;;  %v916_v46 = vmul.f32 %v913_v19, %v882_v42  ;;  %v897_v47 = vadd.f32 %v1940_v44, %v768_v38  ;;  %v947_v50 = vmul.f32 %v945_v35, %v935_v39  ;;  %1971 = vmatpush3.msra.mxu0 %v1327_v28 }
 0x1d0   : > { %v891_v51 = vpop.f32.mrf.mxu0  ;;  %v934_v52 = vadd.f32 %v926_v40, %v2310_v3  ;;  %1972 = vmatprep.subr.mxu0 %v1326_v31 }
 0x1d1   : > { %v937_v55 = vadd.f32 %v929_v45, %v2299_v61  ;;  %v928_v56 = vadd.f32 %v925_v24, %v916_v46  ;;  %v919_v58 = vmul.f32 %v913_v19, %v897_v47  ;;  %v892_v59 = vadd.f32 %v891_v51, %v763_v43  ;;  %1973 = vmatpush3.msra.mxu0 %v1326_v31 }
 0x1d2   : > { %v1943_v60 = vpop.f32.mrf.mxu0  ;;  %v946_v62 = vmul.f32 %v945_v35, %v934_v52  ;;  %v2346_v9 = vadd.f32 %v957_v54, %v947_v50  ;;  %1974 = vmatprep.subr.mxu0 %v1325_v32 }
 0x1d3   : > { %v936_v1 = vadd.f32 %v928_v56, %v2304_v0  ;;  %v931_v2 = vadd.f32 %v925_v24, %v919_v58  ;;  %v918_v4 = vmul.f32 %v913_v19, %v892_v59  ;;  %v949_v6 = vmul.f32 %v945_v35, %v937_v55  ;;  %1975 = vmatpush3.msra.mxu0 %v1325_v32 }
 0x1d4   : > { %v907_v7 = vadd.f32 %v1943_v60, %v778_v63  ;;  %v901_v8 = vpop.f32.mrf.mxu0  ;;  %v2344_v3 = vadd.f32 %v957_v54, %v946_v62  ;;  %1976 = vmatprep.subr.mxu0 %v1324_v33 }
 0x1d5   : > { %v948_v61 = vmul.f32 %v945_v35, %v936_v1  ;;  %v939_v10 = vadd.f32 %v931_v2, %v2289_v53  ;;  %v930_v11 = vadd.f32 %v925_v24, %v918_v4  ;;  %v902_v12 = vadd.f32 %v901_v8, %v773_v5  ;;  %1977 = vmatpush3.msra.mxu0 %v1324_v33 }
 0x1d6   : > { %v921_v13 = vmul.f32 %v913_v19, %v907_v7  ;;  %1952 = vmatprep.mubr.msk.f32.mxu1 %vm977_vm3, %v2344_v3  ;;  %v2358_v53 = vadd.f32 %v957_v54, %v949_v6  ;;  %1978 = vmatprep.subr.mxu0 %v1323_v34 }
 0x1d7   : > { %v938_v0 = vadd.f32 %v930_v11, %v2294_v57  ;;  %v920_v14 = vmul.f32 %v913_v19, %v902_v12  ;;  %1953 = vmatmul.mubr.msk.f32.vlgmr.msra.gmra.mxu1 %vm977_vm3, %v2346_v9  ;;  %v2354_v15 = vadd.f32 %v957_v54, %v948_v61  ;;  %v951_v17 = vmul.f32 %v945_v35, %v939_v10 }
 0x1d8   : > { %v933_v16 = vadd.f32 %v925_v24, %v921_v13  ;;  %2034 = vmatpush3.msra.mxu1 %v1330_v25  ;;  %1979 = vmatpush3.msra.mxu0 %v1323_v34 }
 0x1d9   : > { %v950_v18 = vmul.f32 %v945_v35, %v938_v0  ;;  %v932_v20 = vadd.f32 %v925_v24, %v920_v14  ;;  %1955 = vmatprep.mubr.msk.f32.mxu1 %vm977_vm3, %v2354_v15  ;;  %v2368_v24 = vadd.f32 %v957_v54, %v951_v17  ;;  %2027 = vmatprep.subr.mxu1 %v1329_v26 }
 0x1da   : > { %v941_v21 = vadd.f32 %v933_v16, %v2283_v48  ;;  %2035 = vmatpush3.msra.mxu1 %v1329_v26 }
 0x1db   : > { %v940_v57 = vadd.f32 %v932_v20, %v2285_v49  ;;  %1956 = vmatmul.mubr.msk.f32.gmra.mxu1 %vm977_vm3, %v2358_v53  ;;  %v2364_v19 = vadd.f32 %v957_v54, %v950_v18  ;;  %2028 = vmatprep.subr.mxu1 %v1328_v27 }
 0x1dc   : > { %v953_v22 = vmul.f32 %v945_v35, %v941_v21  ;;  %2036 = vmatpush3.msra.mxu1 %v1328_v27 }
 0x1dd   : > { %v952_v23 = vmul.f32 %v945_v35, %v940_v57  ;;  %1958 = vmatprep.mubr.msk.f32.mxu1 %vm977_vm3, %v2364_v19  ;;  %2029 = vmatprep.subr.mxu1 %v1327_v28  ;;  %v1804_v35 = vld [vmem:[%s522_s28] ss:$0 sm:$0xff] }
 0x1de   : > { %v2376_v49 = vadd.f32 %v957_v54, %v953_v22  ;;  %2037 = vmatpush3.msra.mxu1 %v1327_v28 }
 0x1df   : > { %1959 = vmatmul.mubr.msk.f32.gmra.mxu1 %vm977_vm3, %v2368_v24  ;;  %v2372_v48 = vadd.f32 %v957_v54, %v952_v23  ;;  %2030 = vmatprep.subr.mxu1 %v1326_v31 }
 0x1e0   : > { %2038 = vmatpush3.msra.mxu1 %v1326_v31 }
 0x1e1   : > { %1961 = vmatprep.mubr.msk.f32.mxu1 %vm977_vm3, %v2372_v48  ;;  %2031 = vmatprep.subr.mxu1 %v1325_v32 }
 0x1e2   : > { %2039 = vmatpush3.msra.mxu1 %v1325_v32 }
 0x1e3   : > { %1962 = vmatmul.mubr.msk.f32.gmra.mxu1 %vm977_vm3, %v2376_v49  ;;  %2032 = vmatprep.subr.mxu1 %v1324_v33 }
 0x1e4   : > { %2040 = vmatpush3.msra.mxu1 %v1324_v33 }
 0x1e5   : > { %2033 = vmatprep.subr.mxu1 %v1323_v34 }
 0x1e6   : > { %2041 = vmatpush3.msra.mxu1 %v1323_v34 }
 0x297   : > { %v1954_v36 = vpop.f32.mrf.mxu1 }
 0x298   : > { %v2393_v37 = vadd.f32 %v1954_v36, %v1804_v35 }
 0x299   : > { %v1068_v38 = vpop.f32.mrf.mxu1 }
 0x29a   : > { %v2396_v39 = vmul.f32 0.70710677, %v2393_v37  ;;  %v2398_v40 = vadd.f32 %v1804_v35, %v1068_v38 }
 0x29b   : > { %v1957_v41 = vpop.f32.mrf.mxu1 }
 0x29c   : > { %v1124_v42 = vand.u32 2147483647, %v2396_v39  ;;  %v2402_v43 = vmul.f32 0.70710677, %v2398_v40  ;;  %v2404_v44 = vadd.f32 %v1957_v41, %v1804_v35  ;;  %vm1284_vm4 = vcmp.ge.f32.partialorder %v2396_v39, 0.0 }
 0x29d   : > { %v1078_v45 = vpop.f32.mrf.mxu1 }
 0x29e   : > { %v1132_v46 = vmul.f32 0.3275911, %v1124_v42  ;;  %v1123_v47 = vand.u32 2147483647, %v2402_v43  ;;  %v2408_v50 = vmul.f32 0.70710677, %v2404_v44  ;;  %v2410_v51 = vadd.f32 %v1804_v35, %v1078_v45 }
 0x29f   : > { %v1960_v52 = vpop.f32.mrf.mxu1  ;;  %v1236_v5 = vsub.f32 0.0, %v1124_v42  ;;  %vm1283_vm5 = vcmp.ge.f32.partialorder %v2402_v43, 0.0 }
 0x2a0   : > { %v1140_v54 = vadd.f32 1.0, %v1132_v46  ;;  %v1131_v55 = vmul.f32 0.3275911, %v1123_v47  ;;  %v1126_v56 = vand.u32 2147483647, %v2408_v50  ;;  %v2417_v2 = vadd.f32 %v1960_v52, %v1804_v35 }
 0x2a1   : > { %v2414_v58 = vmul.f32 0.70710677, %v2410_v51  ;;  %v1088_v59 = vpop.f32.mrf.mxu1  ;;  %v1244_v13 = vmul.f32 %v1236_v5, %v1124_v42  ;;  %v1235_v14 = vsub.f32 0.0, %v1123_v47  ;;  %vm1286_vm6 = vcmp.ge.f32.partialorder %v2408_v50, 0.0 }
 0x2a2   : > { %2055 = vrcp.f32 %v1140_v54  ;;  %v1139_v60 = vadd.f32 1.0, %v1131_v55  ;;  %v1134_v62 = vmul.f32 0.3275911, %v1126_v56  ;;  %v2419_v4 = vadd.f32 %v1804_v35, %v1088_v59 }
 0x2a3   : > { %v1125_v63 = vand.u32 2147483647, %v2414_v58  ;;  %v1963_v1 = vpop.f32.mrf.mxu1  ;;  %v2422_v8 = vmul.f32 0.70710677, %v2417_v2  ;;  %v1238_v18 = vsub.f32 0.0, %v1126_v56  ;;  %v1243_v26 = vmul.f32 %v1235_v14, %v1123_v47 }
 0x2a4   : > { %2057 = vrcp.f32 %v1139_v60  ;;  %v1142_v6 = vadd.f32 1.0, %v1134_v62  ;;  %v2426_v12 = vmul.f32 0.70710677, %v2419_v4  ;;  %v2428_v0 = vadd.f32 %v1963_v1, %v1804_v35 }
 0x2a5   : > { %v1133_v7 = vmul.f32 0.3275911, %v1125_v63  ;;  %v1098_v10 = vpop.f32.mrf.mxu1  ;;  %v1128_v11 = vand.u32 2147483647, %v2422_v8  ;;  %v1253_v25 = vmul.f32 1.442695, %v1244_v13  ;;  %v1246_v31 = vmul.f32 %v1238_v18, %v1126_v56 }
 0x2a6   : > { %2059 = vrcp.f32 %v1142_v6  ;;  %v2430_v17 = vadd.f32 %v1804_v35, %v1098_v10  ;;  %v1127_v20 = vand.u32 2147483647, %v2426_v12  ;;  %v2434_v21 = vmul.f32 0.70710677, %v2428_v0 }
 0x2a7   : > { %v1141_v61 = vadd.f32 1.0, %v1133_v7  ;;  %v1136_v16 = vmul.f32 0.3275911, %v1128_v11  ;;  %v1237_v32 = vsub.f32 0.0, %v1125_v63  ;;  %v1240_v45 = vsub.f32 0.0, %v1128_v11 }
 0x2a8   : > { %v1135_v22 = vmul.f32 0.3275911, %v1127_v20  ;;  %v1130_v23 = vand.u32 2147483647, %v2434_v21  ;;  %v2438_v27 = vmul.f32 0.70710677, %v2430_v17 }
 0x2a9   : > { %2061 = vrcp.f32 %v1141_v61  ;;  %v1144_v57 = vadd.f32 1.0, %v1136_v16  ;;  %v1251_v52 = vmul.f32 1.442695, %v1243_v26  ;;  %v1257_v54 = vmul.f32 1.442695, %v1246_v31 }
 0x2aa   : > { %v1143_v33 = vadd.f32 1.0, %v1135_v22  ;;  %v1138_v34 = vmul.f32 0.3275911, %v1130_v23  ;;  %v1129_v36 = vand.u32 2147483647, %v2438_v27  ;;  %v1245_v55 = vmul.f32 %v1237_v32, %v1125_v63 }
 0x2ab   : > { %2063 = vrcp.f32 %v1144_v57  ;;  %v1239_v60 = vsub.f32 0.0, %v1127_v20  ;;  %v1242_v6 = vsub.f32 0.0, %v1130_v23  ;;  %v1248_v61 = vmul.f32 %v1240_v45, %v1128_v11 }
 0x2ac   : > { %2065 = vrcp.f32 %v1143_v33  ;;  %v1146_v38 = vadd.f32 1.0, %v1138_v34  ;;  %v1137_v46 = vmul.f32 0.3275911, %v1129_v36  ;;  %v1255_v14 = vmul.f32 1.442695, %v1245_v55 }
 0x2ad   : > { %2067 = vpow2.f32 %v1253_v25  ;;  %v1247_v57 = vmul.f32 %v1239_v60, %v1127_v20  ;;  %v1250_v26 = vmul.f32 %v1242_v6, %v1130_v23  ;;  %v1261_v32 = vmul.f32 1.442695, %v1248_v61 }
 0x2ae   : > { %2069 = vrcp.f32 %v1146_v38  ;;  %v1145_v62 = vadd.f32 1.0, %v1137_v46  ;;  %v1241_v38 = vsub.f32 0.0, %v1129_v36  ;;  %vm1285_vm7 = vcmp.ge.f32.partialorder %v2414_v58, 0.0 }
 0x2af   : > { %v2440_v28 = vpop.eup %2055  ;;  %v1259_v46 = vmul.f32 1.442695, %v1247_v57  ;;  %v1109_v50 = vmul.f32 0.5, %v2410_v51  ;;  %vm1288_vm8 = vcmp.ge.f32.partialorder %v2422_v8, 0.0  ;;  %vm1287_vm9 = vcmp.ge.f32.partialorder %v2426_v12, 0.0 }
 0x2b0   : > { %v1164_v35 = vmul.f32 1.0614054, %v2440_v28  ;;  %2071 = vrcp.f32 %v1145_v62  ;;  %vm1290_vm10 = vcmp.ge.f32.partialorder %v2434_v21, 0.0  ;;  %vm1289_vm11 = vcmp.ge.f32.partialorder %v2438_v27, 0.0  ;;  %v1813_v27 = vld [vmem:[%s530_s19] ss:$0 sm:$0xff] }
 0x2b1   : > { %v2444_v41 = vpop.eup %2057  ;;  %2073 = vpow2.f32 %v1251_v52  ;;  %v1469_v21 = vsub.s32 6, %v2268_v29 }
 0x2b2   : > { %v1172_v42 = vadd.f32 -1.4531521, %v1164_v35  ;;  %v1163_v47 = vmul.f32 1.0614054, %v2444_v41  ;;  %2075 = vpow2.f32 %v1257_v54  ;;  %v1265_v54 = vmul.f32 1.442695, %v1250_v26 }
 0x2b3   : > { %v2447_v56 = vpop.eup %2059  ;;  %2077 = vpow2.f32 %v1255_v14 }
 0x2b4   : > { %v1180_v59 = vmul.f32 %v2440_v28, %v1172_v42  ;;  %v1171_v1 = vadd.f32 -1.4531521, %v1163_v47  ;;  %v1166_v5 = vmul.f32 1.0614054, %v2447_v56  ;;  %v2464_v47 = vmul.f32 0.5, %v2398_v40 }
 0x2b5   : > { %2079 = vpow2.f32 %v1261_v32  ;;  %v1249_v40 = vmul.f32 %v1241_v38, %v1129_v36 }
 0x2b6   : > { %v1188_v7 = vadd.f32 1.4214138, %v1180_v59  ;;  %v2451_v10 = vpop.eup %2061  ;;  %v1179_v13 = vmul.f32 %v2444_v41, %v1171_v1  ;;  %v1174_v63 = vadd.f32 -1.4531521, %v1166_v5  ;;  %2081 = vpow2.f32 %v1259_v46 }
 0x2b7   : > { %v1165_v18 = vmul.f32 1.0614054, %v2451_v10  ;;  %2083 = vpow2.f32 %v1265_v54 }
 0x2b8   : > { %v1196_v16 = vmul.f32 %v2440_v28, %v1188_v7  ;;  %v1187_v22 = vadd.f32 1.4214138, %v1179_v13  ;;  %v1182_v25 = vmul.f32 %v2447_v56, %v1174_v63  ;;  %v2457_v33 = vpop.eup %2063 }
 0x2b9   : > { %v1173_v11 = vadd.f32 -1.4531521, %v1165_v18  ;;  %v1168_v20 = vmul.f32 1.0614054, %v2457_v33  ;;  %v2467_v55 = vpop.eup %2065 }
 0x2ba   : > { %v1204_v31 = vadd.f32 -0.28449672, %v1196_v16  ;;  %v1195_v34 = vmul.f32 %v2444_v41, %v1187_v22  ;;  %v1190_v35 = vadd.f32 1.4214138, %v1182_v25  ;;  %v2068_v1 = vpop.eup %2067  ;;  %v1167_v7 = vmul.f32 1.0614054, %v2467_v55 }
 0x2bb   : > { %v1181_v45 = vmul.f32 %v2451_v10, %v1173_v11  ;;  %v1176_v62 = vadd.f32 -1.4531521, %v1168_v20  ;;  %v2475_v14 = vpop.eup %2069 }
 0x2bc   : > { %v1212_v42 = vmul.f32 %v2440_v28, %v1204_v31  ;;  %v1203_v23 = vadd.f32 -0.28449672, %v1195_v34  ;;  %v1198_v52 = vmul.f32 %v2447_v56, %v1190_v35  ;;  %v1175_v57 = vadd.f32 -1.4531521, %v1167_v7 }
 0x2bd   : > { %v1189_v60 = vadd.f32 1.4214138, %v1181_v45  ;;  %v1184_v63 = vmul.f32 %v2457_v33, %v1176_v62  ;;  %v1170_v36 = vmul.f32 1.0614054, %v2475_v14  ;;  %v1263_v34 = vmul.f32 1.442695, %v1249_v40 }
 0x2be   : > { %v1220_v59 = vadd.f32 0.2548296, %v1212_v42  ;;  %v1211_v5 = vmul.f32 %v2444_v41, %v1203_v23  ;;  %v1206_v6 = vadd.f32 -0.28449672, %v1198_v52  ;;  %v1183_v32 = vmul.f32 %v2467_v55, %v1175_v57 }
 0x2bf   : > { %v1197_v13 = vmul.f32 %v2451_v10, %v1189_v60  ;;  %v1192_v26 = vadd.f32 1.4214138, %v1184_v63  ;;  %v1178_v20 = vadd.f32 -1.4531521, %v1170_v36  ;;  %2085 = vpow2.f32 %v1263_v34 }
 0x2c0   : > { %v1228_v61 = vmul.f32 %v2440_v28, %v1220_v59  ;;  %v1219_v16 = vadd.f32 0.2548296, %v1211_v5  ;;  %v1214_v18 = vmul.f32 %v2447_v56, %v1206_v6  ;;  %v2480_v28 = vpop.eup %2071  ;;  %v1191_v52 = vadd.f32 1.4214138, %v1183_v32 }
 0x2c1   : > { %v1205_v25 = vadd.f32 -0.28449672, %v1197_v13  ;;  %v2074_v35 = vpop.eup %2073  ;;  %v1200_v45 = vmul.f32 %v2457_v33, %v1192_v26  ;;  %v1169_v54 = vmul.f32 1.0614054, %v2480_v28 }
 0x2c2   : > { %v1268_v22 = vmul.f32 %v2068_v1, %v1228_v61  ;;  %v1227_v31 = vmul.f32 %v2444_v41, %v1219_v16  ;;  %v1222_v11 = vadd.f32 0.2548296, %v1214_v18  ;;  %v2076_v41 = vpop.eup %2075  ;;  %v1186_v1 = vmul.f32 %v2475_v14, %v1178_v20 }
 0x2c3   : > { %v1213_v42 = vmul.f32 %v2451_v10, %v1205_v25  ;;  %v1208_v62 = vadd.f32 -0.28449672, %v1200_v45  ;;  %v1199_v7 = vmul.f32 %v2467_v55, %v1191_v52  ;;  %v1177_v40 = vadd.f32 -1.4531521, %v1169_v54  ;;  %v2078_v61 = vpop.eup %2077 }
 0x2c4   : > { %v1276_v38 = vsub.f32 1.0, %v1268_v22  ;;  %v1267_v46 = vmul.f32 %v2074_v35, %v1227_v31  ;;  %v1230_v23 = vmul.f32 %v2447_v56, %v1222_v11  ;;  %v1194_v16 = vadd.f32 1.4214138, %v1186_v1  ;;  %v2080_v11 = vpop.eup %2079 }
 0x2c5   : > { %v1221_v60 = vadd.f32 0.2548296, %v1213_v42  ;;  %v1216_v63 = vmul.f32 %v2457_v33, %v1208_v62  ;;  %v1207_v22 = vadd.f32 -0.28449672, %v1199_v7  ;;  %v1185_v31 = vmul.f32 %v2480_v28, %v1177_v40  ;;  %v2082_v34 = vpop.eup %2081 }
 0x2c6   : > { %v1292_v59 = vsub.f32 0.0, %v1276_v38  ;;  %v1275_v5 = vsub.f32 1.0, %v1267_v46  ;;  %v1270_v6 = vmul.f32 %v2076_v41, %v1230_v23  ;;  %v1202_v36 = vmul.f32 %v2475_v14, %v1194_v16  ;;  %v2084_v41 = vpop.eup %2083 }
 0x2c7   : > { %v1229_v56 = vmul.f32 %v2451_v10, %v1221_v60  ;;  %v1224_v26 = vadd.f32 0.2548296, %v1216_v63  ;;  %v1215_v10 = vmul.f32 %v2467_v55, %v1207_v22  ;;  %v1108_v46 = vmul.f32 0.5, %v2393_v37 }
 0x2c8   : > { %v1300_v13 = vsel %vm1284_vm4, %v1276_v38, %v1292_v59  ;;  %v1291_v18 = vsub.f32 0.0, %v1275_v5  ;;  %v1278_v57 = vsub.f32 1.0, %v1270_v6  ;;  %v1210_v20 = vadd.f32 -0.28449672, %v1202_v36 }
 0x2c9   : > { %v1269_v25 = vmul.f32 %v2078_v61, %v1229_v56  ;;  %v1308_v32 = vadd.f32 1.0, %v1300_v13  ;;  %v1232_v45 = vmul.f32 %v2457_v33, %v1224_v26  ;;  %v1223_v52 = vadd.f32 0.2548296, %v1215_v10 }
 0x2ca   : > { %v1299_v39 = vsel %vm1283_vm5, %v1275_v5, %v1291_v18  ;;  %v1294_v35 = vsub.f32 0.0, %v1278_v57  ;;  %v1193_v54 = vadd.f32 1.4214138, %v1185_v31  ;;  %v1218_v33 = vmul.f32 %v2475_v14, %v1210_v20 }
 0x2cb   : > { %v1307_v38 = vadd.f32 1.0, %v1299_v39  ;;  %v1277_v42 = vsub.f32 1.0, %v1269_v25  ;;  %v1272_v60 = vmul.f32 %v2080_v11, %v1232_v45  ;;  %v1316_v62 = vmul.f32 %v1308_v32, %v1108_v46 }
 0x2cc   : > { %v1302_v23 = vsel %vm1286_vm6, %v1278_v57, %v1294_v35  ;;  %v1231_v1 = vmul.f32 %v2467_v55, %v1223_v52  ;;  %v1201_v5 = vmul.f32 %v2480_v28, %v1193_v54  ;;  %v1226_v61 = vadd.f32 0.2548296, %v1218_v33  ;;  %v2086_v36 = vpop.eup %2085 }
 0x2cd   : > { %v1315_v43 = vmul.f32 %v1307_v38, %v2464_v47  ;;  %v1293_v59 = vsub.f32 0.0, %v1277_v42  ;;  %v1310_v37 = vadd.f32 1.0, %v1302_v23  ;;  %v1280_v7 = vsub.f32 1.0, %v1272_v60 }
 0x2ce   : > { %v1271_v47 = vmul.f32 %v2082_v34, %v1231_v1  ;;  %v1209_v58 = vadd.f32 -0.28449672, %v1201_v5  ;;  %v1110_v13 = vmul.f32 0.5, %v2404_v44  ;;  %v1234_v16 = vmul.f32 %v2475_v14, %v1226_v61 }
 0x2cf   : > { %v1301_v6 = vsel %vm1285_vm7, %v1277_v42, %v1293_v59  ;;  %1980 = vmatprep.mubr.msk.f32.mxu0 %vm780_vm2, %v1315_v43  ;;  %v1296_v55 = vsub.f32 0.0, %v1280_v7  ;;  %v1111_v14 = vmul.f32 0.5, %v2419_v4  ;;  %v1112_v39 = vmul.f32 0.5, %v2417_v2 }
 0x2d0   : > { %v1309_v40 = vadd.f32 1.0, %v1301_v6  ;;  %1981 = vmatmul.mubr.msk.f32.vlgmr.msra.gmra.mxu0 %vm780_vm2, %v1316_v62  ;;  %v1279_v63 = vsub.f32 1.0, %v1271_v47  ;;  %v1217_v51 = vmul.f32 %v2480_v28, %v1209_v58  ;;  %v1318_v18 = vmul.f32 %v1310_v37, %v1110_v13 }
 0x2d1   : > { %v1304_v57 = vsel %vm1288_vm8, %v1280_v7, %v1296_v55  ;;  %v1274_v25 = vmul.f32 %v2084_v41, %v1234_v16  ;;  %v1113_v2 = vmul.f32 0.5, %v2430_v17  ;;  %v1114_v46 = vmul.f32 0.5, %v2428_v0 }
 0x2d2   : > { %v1317_v56 = vmul.f32 %v1309_v40, %v1109_v50  ;;  %v1295_v22 = vsub.f32 0.0, %v1279_v63  ;;  %v1225_v26 = vadd.f32 0.2548296, %v1217_v51  ;;  %v1312_v44 = vadd.f32 1.0, %v1304_v57 }
 0x2d3   : > { %v1282_v31 = vsub.f32 1.0, %v1274_v25  ;;  %v1481_v54 = vsub.s32 7, %v2268_v29  ;;  %v1470_v17 = vrot.slane %v2271_v30, %v1469_v21 }
 0x2d4   : > { %1983 = vmatprep.mubr.msk.f32.mxu1 %vm780_vm2, %v1317_v56  ;;  %v1303_v8 = vsel %vm1287_vm9, %v1279_v63, %v1295_v22  ;;  %v1233_v11 = vmul.f32 %v2480_v28, %v1225_v26  ;;  %v1320_v42 = vmul.f32 %v1312_v44, %v1112_v39 }
 0x2d5   : > { %1984 = vmatmul.mubr.msk.f32.vlgmr.msra.gmra.mxu1 %vm780_vm2, %v1318_v18  ;;  %v1311_v32 = vadd.f32 1.0, %v1303_v8  ;;  %v1298_v35 = vsub.f32 0.0, %v1282_v31  ;;  %v1482_v0 = vrot.slane %v2271_v30, %v1481_v54 }
 0x2d6   : > { %v1273_v10 = vmul.f32 %v2086_v36, %v1233_v11 }
 0x2d7   : > { %v1319_v38 = vmul.f32 %v1311_v32, %v1111_v14  ;;  %v1306_v12 = vsel %vm1290_vm10, %v1282_v31, %v1298_v35 }
 0x2d8   : > { %v1281_v45 = vsub.f32 1.0, %v1273_v10  ;;  %v1314_v4 = vadd.f32 1.0, %v1306_v12 }
 0x2d9   : > { %1986 = vmatprep.mubr.msk.f32.mxu1 %vm780_vm2, %v1319_v38 }
 0x2da   : > { %v1297_v20 = vsub.f32 0.0, %v1281_v45  ;;  %1987 = vmatmul.mubr.msk.f32.gmra.mxu1 %vm780_vm2, %v1320_v42  ;;  %v1322_v52 = vmul.f32 %v1314_v4, %v1114_v46 }
 0x2dc   : > { %v1305_v28 = vsel %vm1289_vm11, %v1281_v45, %v1297_v20 }
 0x2dd   : > { %v1313_v34 = vadd.f32 1.0, %v1305_v28 }
 0x2df   : > { %v1321_v23 = vmul.f32 %v1313_v34, %v1113_v2 }
 0x2e1   : > { %1989 = vmatprep.mubr.msk.f32.mxu1 %vm780_vm2, %v1321_v23 }
 0x2e2   : > { %1990 = vmatmul.mubr.msk.f32.gmra.mxu1 %vm780_vm2, %v1322_v52 }
 0x390   : > { %v1982_v41 = vpop.f32.mrf.mxu0 }
 0x391   : > { %v1434_v43 = vadd.f32 %v1982_v41, %v1813_v27 }
 0x392   : > { %v1428_v59 = vpop.f32.mrf.mxu0 }
 0x393   : > { %v1472_v60 = vmul.f32 %v1470_v17, %v1434_v43  ;;  %v1429_v62 = vadd.f32 %v1813_v27, %v1428_v59 }
 0x395   : > { %v1484_v1 = vadd.f32 %v1482_v0, %v1472_v60  ;;  %v1471_v33 = vmul.f32 %v1470_v17, %v1429_v62  ;;  %v1985_v5 = vpop.f32.mrf.mxu1 }
 0x396   : > { %v1444_v37 = vadd.f32 %v1985_v5, %v1813_v27 }
 0x397   : > { %v1492_v29 = vadd.f32 %v1484_v1, %v2346_v9  ;;  %v1483_v50 = vadd.f32 %v1482_v0, %v1471_v33  ;;  %v1438_v6 = vpop.f32.mrf.mxu1 }
 0x398   : > { %v1474_v7 = vmul.f32 %v1470_v17, %v1444_v37  ;;  %v1439_v40 = vadd.f32 %v1813_v27, %v1438_v6 }
 0x399   : > { %1500 = vst.msk [vmem:[#allocation2 + $0x8] sm:$0xff] %vm977_vm3, %v1492_v29  ;;  %v1491_v47 = vadd.f32 %v1483_v50, %v2344_v3 }
 0x39a   : > { %v1486_v61 = vadd.f32 %v1482_v0, %v1474_v7  ;;  %v1473_v58 = vmul.f32 %v1470_v17, %v1439_v40  ;;  %v1988_v55 = vpop.f32.mrf.mxu1 }
 0x39b   : > { %1499 = vst.msk [vmem:[#allocation2] sm:$0xff] %vm977_vm3, %v1491_v47  ;;  %v1454_v56 = vadd.f32 %v1988_v55, %v1813_v27 }
 0x39c   : > { %v1494_v30 = vadd.f32 %v1486_v61, %v2358_v53  ;;  %v1485_v13 = vadd.f32 %v1482_v0, %v1473_v58  ;;  %v1448_v63 = vpop.f32.mrf.mxu1 }
 0x39d   : > { %v1476_v16 = vmul.f32 %v1470_v17, %v1454_v56  ;;  %v1449_v51 = vadd.f32 %v1813_v27, %v1448_v63 }
 0x39e   : > { %1502 = vst.msk [vmem:[#allocation2 + $0x18] sm:$0xff] %vm977_vm3, %v1494_v30  ;;  %v1493_v9 = vadd.f32 %v1485_v13, %v2354_v15 }
 0x39f   : > { %v1488_v18 = vadd.f32 %v1482_v0, %v1476_v16  ;;  %v1475_v3 = vmul.f32 %v1470_v17, %v1449_v51 }
 0x3a0   : > { %1501 = vst.msk [vmem:[#allocation2 + $0x10] sm:$0xff] %vm977_vm3, %v1493_v9 }
 0x3a1   : > { %v1496_v57 = vadd.f32 %v1488_v18, %v2368_v24  ;;  %v1487_v22 = vadd.f32 %v1482_v0, %v1475_v3 }
 0x3a2   : > { %v1991_v25 = vpop.f32.mrf.mxu1 }
 0x3a3   : > { %1504 = vst.msk [vmem:[#allocation2 + $0x28] sm:$0xff] %vm977_vm3, %v1496_v57  ;;  %v1495_v53 = vadd.f32 %v1487_v22, %v2364_v19  ;;  %v1464_v26 = vadd.f32 %v1991_v25, %v1813_v27 }
 0x3a4   : > { %v1458_v36 = vpop.f32.mrf.mxu1 }
 0x3a5   : > { %1503 = vst.msk [vmem:[#allocation2 + $0x20] sm:$0xff] %vm977_vm3, %v1495_v53  ;;  %v1478_v15 = vmul.f32 %v1470_v17, %v1464_v26  ;;  %v1459_v44 = vadd.f32 %v1813_v27, %v1458_v36 }
 0x3a7   : > { %v1490_v8 = vadd.f32 %v1482_v0, %v1478_v15  ;;  %v1477_v31 = vmul.f32 %v1470_v17, %v1459_v44 }
 0x3a9   : > { %v1498_v11 = vadd.f32 %v1490_v8, %v2376_v49  ;;  %v1489_v14 = vadd.f32 %v1482_v0, %v1477_v31  ;;  %1510 = sbr.rel (%p1822_p5) target bundleno = 1351 (0x547), region = 80 }
 0x3ab   : > { %1506 = vst.msk [vmem:[#allocation2 + $0x38] sm:$0xff] %vm977_vm3, %v1498_v11  ;;  %v1497_v24 = vadd.f32 %v1489_v14, %v2372_v48 }
 0x3ad   : > { %1505 = vst.msk [vmem:[#allocation2 + $0x30] sm:$0xff] %vm977_vm3, %v1497_v24 }
 0x3ae   : > { %v2096_v32 = vmov 0.0   ;;  %vm2097_vm12 = vmmov 0   ;;  %v1517_v49 = vld [vmem:[#allocation2 + $0x28] sm:$0xff]  ;;  %v1596_v35 = vld [vmem:[%s2586_s4 + $0x18] sm:$0xff]  ;;  %v1595_v48 = vld [vmem:[%s2586_s4 + $0x10] sm:$0xff]  ;;  %vm1677_vm13 = vcmask 60416  }
 0x3af   : > { %1992 = vmatprep.subr.mxu0 %v2096_v32  ;;  %2008 = vmatprep.mubr.msk.f32.mxu0 %vm2097_vm12, %v2096_v32  ;;  %v1516_v10 = vld [vmem:[#allocation2 + $0x20] sm:$0xff]  ;;  %v1594_v38 = vld [vmem:[%s2586_s4 + $0x8] sm:$0xff]  ;;  %v1515_v42 = vld [vmem:[#allocation2 + $0x18] sm:$0xff] }
 0x3b0   : > { %2011 = vmatprep.subr.mxu1 %v2096_v32  ;;  %2019 = vmatprep.mubr.msk.f32.mxu1 %vm2097_vm12, %v2096_v32  ;;  %v1514_v45 = vld [vmem:[#allocation2 + $0x10] sm:$0xff]  ;;  %v1513_v12 = vld [vmem:[#allocation2 + $0x8] sm:$0xff]  ;;  %v1512_v20 = vld [vmem:[#allocation2] sm:$0xff] }
 0x3b1   : > { %2012 = vmatpush3.msra.mxu1 %v1596_v35  ;;  %v1511_v4 = vld [vmem:[%s2585_s3] sm:$0xf] }
 0x3b2   : > { %v1519_v19 = vld [vmem:[#allocation2 + $0x38] sm:$0xff]  ;;  %2013 = vmatprep.subr.mxu1 %v2096_v32  ;;  %v1593_v28 = vld [vmem:[%s2586_s4] sm:$0xff] }
 0x3b3   : > { %1993 = vmatpush3.msra.mxu0 %v1519_v19  ;;  %2014 = vmatpush3.msra.mxu1 %v1595_v48  ;;  %v1824_v46 = vld [vmem:[%s2587_s5] ss:$0 sm:$0xff] }
 0x3b4   : > { %v1518_v39 = vld [vmem:[#allocation2 + $0x30] sm:$0xff]  ;;  %1994 = vmatprep.subr.mxu0 %v2096_v32  ;;  %2015 = vmatprep.subr.mxu1 %v2096_v32 }
 0x3b5   : > { %1995 = vmatpush3.msra.mxu0 %v1518_v39  ;;  %2016 = vmatpush3.msra.mxu1 %v1594_v38 }
 0x3b6   : > { %1996 = vmatprep.subr.mxu0 %v2096_v32  ;;  %2017 = vmatprep.subr.mxu1 %v2096_v32 }
 0x3b7   : > { %1997 = vmatpush3.msra.mxu0 %v1517_v49  ;;  %2018 = vmatpush3.msra.mxu1 %v1593_v28 }
 0x3b8   : > { %1998 = vmatprep.subr.mxu0 %v2096_v32 }
 0x3b9   : > { %1999 = vmatpush3.msra.mxu0 %v1516_v10 }
 0x3ba   : > { %2000 = vmatprep.subr.mxu0 %v2096_v32 }
 0x3bb   : > { %2001 = vmatpush3.msra.mxu0 %v1515_v42 }
 0x3bc   : > { %2002 = vmatprep.subr.mxu0 %v2096_v32 }
 0x3bd   : > { %2003 = vmatpush3.msra.mxu0 %v1514_v45 }
 0x3be   : > { %2004 = vmatprep.subr.mxu0 %v2096_v32 }
 0x3bf   : > { %2005 = vmatpush3.msra.mxu0 %v1513_v12 }
 0x3c0   : > { %2006 = vmatprep.subr.mxu0 %v2096_v32 }
 0x3c1   : > { %2007 = vmatpush3.msra.mxu0 %v1512_v20 }
 0x3c2   : > { %2009 = vmatmul.mubr.msk.f32.vlgmr.msra.gmra.mxu0 %vm780_vm2, %v1511_v4 }
 0x482   : > { %v1589_v2 = vpop.f32.mrf.mxu0 }
 0x483   : > { %2020 = vmatmul.mubr.msk.f32.vlgmr.msra.gmra.mxu1 %vm977_vm3, %v1589_v2 }
 0x484   : > { %v2010_v34 = vpop.f32.mrf.mxu0 }
 0x543   : > { %v1673_v23 = vpop.f32.mrf.mxu1 }
 0x544   : > { %v1674_v52 = vadd.f32 %v1824_v46, %v1673_v23 }
 0x545   : > { %v2021_v21 = vpop.f32.mrf.mxu1 }
 0x546   : > { %1678 = vst.msk [vmem:[%s2603_s14] sm:$0xf] %vm1677_vm13, %v1674_v52 }
 0x547 PF: > { %s2604_s17 = sld [smem:[#allocation3_spill]] }
 0x54d   : > { %s23_s25 = sadd.s32 1, %s2604_s17  }
 0x54e   : > { %p20_p6 = scmp.ge.s32.totalorder %s23_s25, 4  }
 0x550   :  { %22 = sbr.rel (!%p20_p6) target bundleno = 4 (0x4), region = 124 }

</bundles_post_ra>
